<compile_context>
chip_gen: v7x
topology: tpu7x:2x2x1
jax: 0.10.0
libtpu: 0.0.40
codegen_flags: <defaults>
</compile_context>

<pallas_src>
import functools

import jax
import jax.numpy as jnp
from jax.experimental import pallas as pl
from jax.experimental.pallas import tpu as pltpu

EPS = 1e-3  # BatchNorm2d(eps=0.001)


def _round_up(x, m):
    return (x + m - 1) // m * m


def _vmem_budget_bytes():
    """Per-chip VMEM budget: ~3/4 of physical (v7x: 64 MiB -> 48 MiB,
    v5e/v6e: 128 MiB -> 96 MiB), conservative fallback if the query fails."""
    try:
        phys = int(getattr(pltpu.get_tpu_info(), "vmem_capacity_bytes"))
        return min(phys * 3 // 4, 96 * 1024 * 1024)
    except Exception:
        return 32 * 1024 * 1024


def _conv_block(x_ref, w_ref, *, kh, kw, w_in, cout, slab):
    """Valid conv for a block of images on the flattened-spatial slab.

    x_ref: (B, Cin, SP) -- channel-major, spatial flattened as h*W + w, with
           SP >= (KH-1)*W + (KW-1) + SLAB so every shifted slice is in bounds.
    w_ref: (KH*KW, Cout, Cin) -- tap-major weights.
    Returns (B, Cout, SLAB) f32 where column c = oh*W + ow_raw.  Columns with
    ow_raw >= OW (or c >= OH*W) are garbage and are masked out of the
    statistics / sliced away in the wrapper.
    """
    bsz, cin, _ = x_ref.shape
    w_all = w_ref[...]                                   # (KH*KW, Cout, Cin)
    acc = jnp.zeros((bsz, cout, slab), jnp.float32)
    for i in range(kh):
        for j in range(kw):
            start = i * w_in + j
            xs = x_ref[:, :, start:start + slab]         # (B, Cin, SLAB)
            wt = jnp.broadcast_to(w_all[i * kw + j], (bsz, cout, cin))
            # Batched (Cout,Cin) @ (Cin,SLAB) per image -> (B, Cout, SLAB).
            acc = acc + jax.lax.dot_general(
                wt, xs,
                dimension_numbers=(((2,), (1,)), ((0,), (0,))),
                preferred_element_type=jnp.float32)
    return acc


def _stats_kernel(x_ref, w_ref, mask_ref, sum_ref, sq_ref, *,
                  kh, kw, w_in, cout, slab):
    """Pass 1: per-block partial per-channel sum / sum-of-squares (parallel)."""
    y = _conv_block(x_ref, w_ref, kh=kh, kw=kw, w_in=w_in, cout=cout, slab=slab)
    m = mask_ref[...]                        # (1, SLAB) of {0.0, 1.0}
    ym = y * m
    # Reduce the leading batch axis first (plain VPU adds), then one lane
    # reduction per (large) block -> two (Cout, 1) partials per grid step.
    s_b = jnp.sum(ym, axis=0)                # (Cout, SLAB)
    q_b = jnp.sum(ym * y, axis=0)            # (Cout, SLAB)
    sum_ref[...] = jnp.sum(s_b, axis=1, keepdims=True)
    sq_ref[...] = jnp.sum(q_b, axis=1, keepdims=True)


def _apply_kernel(x_ref, w_ref, scale_ref, shift_ref, o_ref, *,
                  kh, kw, w_in, cout, slab):
    """Pass 2: recompute conv, apply precomputed y*scale + shift, ReLU."""
    y = _conv_block(x_ref, w_ref, kh=kh, kw=kw, w_in=w_in, cout=cout, slab=slab)
    o_ref[...] = jnp.maximum(y * scale_ref[...] + shift_ref[...],
                             0.0).astype(o_ref.dtype)


def batch_norm_conv2d(x_nchw, conv_w, conv_b, bn_gamma, bn_beta):
    """Forward pass equivalent to the PyTorch BatchNormConv2d module.

    x_nchw:  (N, Cin, H, W) float32
    conv_w:  (Cout, Cin, KH, KW)  (PyTorch OIHW layout)
    conv_b:  (Cout,)  -- accepted but unused: BN mean subtraction cancels it.
    bn_gamma, bn_beta: (Cout,)
    returns: (N, Cout, OH, OW) float32
    """
    n, cin, h, w = x_nchw.shape
    cout, cin_w, kh, kw = conv_w.shape
    assert cin == cin_w
    oh, ow = h - kh + 1, w - kw + 1
    del conv_b  # cancelled exactly by the BatchNorm centering

    slab = _round_up(oh * w, 128)            # lane-dense output width
    s_max = (kh - 1) * w + (kw - 1)          # largest tap offset
    sp = slab + s_max                        # minimal padded input width (>= H*W)

    # NCHW is already channel-major / spatial row-major: flatten + small pad.
    x2 = x_nchw.astype(jnp.float32).reshape(n, cin, h * w)
    x2 = jnp.pad(x2, ((0, 0), (0, 0), (0, sp - h * w)))

    # Tap-major weights: w_all[i*KW + j] = conv_w[:, :, i, j] -> (KH*KW, Cout, Cin)
    w_all = jnp.transpose(conv_w.astype(jnp.float32), (2, 3, 0, 1)).reshape(
        kh * kw, cout, cin)

    # Valid-column mask: c = oh*W + ow_raw valid iff ow_raw < OW and c < OH*W.
    col = jnp.arange(slab, dtype=jnp.int32)
    mask = (((col % w) < ow) & (col < oh * w)).astype(jnp.float32).reshape(1, slab)

    count = n * oh * ow

    # ---- Batch-block sizing from per-chip VMEM budget + DMA-size target. ----
    vmem_budget = _vmem_budget_bytes()
    cout_pad = _round_up(cout, 8)
    cin_pad = _round_up(cin, 8)
    lanes_sp = _round_up(sp, 128)
    lanes_slab = _round_up(slab, 128)
    # double-buffered x block + double-buffered out block + conv intermediates
    per_img = 4 * (2 * cin_pad * lanes_sp + 2 * cout_pad * lanes_slab
                   + 3 * cout_pad * lanes_slab)
    b_vmem = max(1, vmem_budget // per_img)
    b_dma = max(1, (4 << 20) // (cin * sp * 4))   # ~4 MiB x block per grid step
    b_blk = max(1, min(n, b_vmem, b_dma))
    while n % b_blk:                              # keep blocks evenly divisible
        b_blk -= 1
    n_blocks = n // b_blk

    flops_conv = 2 * kh * kw * cin * cout * n * slab
    x_bytes = int(x2.size) * 4

    # ---- Pass 1: per-block partial sum / sum-of-squares (parallel grid). ----
    psum, psq = pl.pallas_call(
        functools.partial(_stats_kernel, kh=kh, kw=kw, w_in=w, cout=cout,
                          slab=slab),
        out_shape=(jax.ShapeDtypeStruct((n_blocks, cout, 1), jnp.float32),
                   jax.ShapeDtypeStruct((n_blocks, cout, 1), jnp.float32)),
        grid=(n_blocks,),
        in_specs=[
            pl.BlockSpec((b_blk, cin, sp), lambda i: (i, 0, 0)),        # x slab
            pl.BlockSpec((kh * kw, cout, cin), lambda i: (0, 0, 0)),    # weights
            pl.BlockSpec((1, slab), lambda i: (0, 0)),                  # mask
        ],
        out_specs=(
            pl.BlockSpec((None, cout, 1), lambda i: (i, 0, 0)),
            pl.BlockSpec((None, cout, 1), lambda i: (i, 0, 0)),
        ),
        compiler_params=pltpu.CompilerParams(
            dimension_semantics=("parallel",),
            vmem_limit_bytes=vmem_budget),
        cost_estimate=pl.CostEstimate(
            flops=flops_conv + 4 * n * cout * slab,
            transcendentals=0,
            bytes_accessed=x_bytes + int(w_all.size) * 4 + int(mask.size) * 4
                           + 2 * n_blocks * cout * 4),
    )(x2, w_all, mask)

    # ---- Hoisted BN statistics: combine partials, fold into scale/shift. ----
    ssum = jnp.sum(psum, axis=0)                    # (Cout, 1)
    ssq = jnp.sum(psq, axis=0)                      # (Cout, 1)
    inv_count = 1.0 / float(count)
    mean = ssum * inv_count
    var = ssq * inv_count - mean * mean             # biased variance (train BN)
    inv_std = jax.lax.rsqrt(var + EPS)
    scale = bn_gamma.astype(jnp.float32).reshape(cout, 1) * inv_std
    shift = bn_beta.astype(jnp.float32).reshape(cout, 1) - mean * scale

    # ---- Pass 2: recompute conv, apply scale/shift + ReLU (parallel grid). ----
    out_slab = pl.pallas_call(
        functools.partial(_apply_kernel, kh=kh, kw=kw, w_in=w, cout=cout,
                          slab=slab),
        out_shape=jax.ShapeDtypeStruct((n, cout, slab), jnp.float32),
        grid=(n_blocks,),
        in_specs=[
            pl.BlockSpec((b_blk, cin, sp), lambda i: (i, 0, 0)),        # x slab
            pl.BlockSpec((kh * kw, cout, cin), lambda i: (0, 0, 0)),    # weights
            pl.BlockSpec((cout, 1), lambda i: (0, 0)),                  # scale
            pl.BlockSpec((cout, 1), lambda i: (0, 0)),                  # shift
        ],
        out_specs=pl.BlockSpec((b_blk, cout, slab), lambda i: (i, 0, 0)),
        compiler_params=pltpu.CompilerParams(
            dimension_semantics=("parallel",),
            vmem_limit_bytes=vmem_budget),
        cost_estimate=pl.CostEstimate(
            flops=flops_conv + 3 * n * cout * slab,
            transcendentals=0,
            bytes_accessed=x_bytes + n * cout * slab * 4),
    )(x2, w_all, scale, shift)

    # Output is already channel-major (NCHW-like): drop garbage columns only.
    out = out_slab[:, :, :oh * w].reshape(n, cout, oh, w)[:, :, :, :ow]
    return out


def _reference(x_nchw, conv_w, conv_b, bn_gamma, bn_beta):
    """Pure-JAX reference mirroring PyTorch semantics (training-mode BN)."""
    y = jax.lax.conv_general_dilated(
        x_nchw, conv_w, window_strides=(1, 1), padding="VALID",
        dimension_numbers=("NCHW", "OIHW", "NCHW"),
    ) + conv_b[None, :, None, None]
    mean = jnp.mean(y, axis=(0, 2, 3), keepdims=True)
    var = jnp.mean((y - mean) ** 2, axis=(0, 2, 3), keepdims=True)  # biased
    y_hat = (y - mean) * jax.lax.rsqrt(var + EPS)
    y_hat = y_hat * bn_gamma[None, :, None, None] + bn_beta[None, :, None, None]
    return jnp.maximum(y_hat, 0.0)


if __name__ == "__main__":
    key = jax.random.PRNGKey(0)
    k_x, k_w, k_b = jax.random.split(key, 3)

    N, CIN, H, W = 2, 4, 16, 16
    COUT, KH, KW = 8, 3, 3  # BatchNormConv2d(4, 8, kernel_size=3)

    x = jax.random.normal(k_x, (N, CIN, H, W), dtype=jnp.float32)
    fan_in = CIN * KH * KW
    bound = 1.0 / (fan_in ** 0.5)
    conv_w = jax.random.uniform(k_w, (COUT, CIN, KH, KW), jnp.float32, -bound, bound)
    conv_b = jax.random.uniform(k_b, (COUT,), jnp.float32, -bound, bound)
    bn_gamma = jnp.ones((COUT,), jnp.float32)   # BatchNorm2d default affine init
    bn_beta = jnp.zeros((COUT,), jnp.float32)

    out = batch_norm_conv2d(x, conv_w, conv_b, bn_gamma, bn_beta)
    out = jax.block_until_ready(out)

    ref = _reference(x, conv_w, conv_b, bn_gamma, bn_beta)
    assert out.shape == (N, COUT, H - KH + 1, W - KW + 1)
    assert jnp.allclose(out, ref, atol=1e-3, rtol=1e-3), "mismatch vs JAX reference"

    print("KERNEL_OK")
</pallas_src>

<mosaic_0001>
module attributes {stable_mosaic.version = 11 : i64} {
  func.func @_stats_kernel(%arg0: i32, %arg1: memref<2x4x290xf32, #tpu.memory_space<vmem>>, %arg2: memref<9x8x4xf32, #tpu.memory_space<vmem>>, %arg3: memref<1x256xf32, #tpu.memory_space<vmem>>, %arg4: memref<1x8x1xf32, #tpu.memory_space<vmem>>, %arg5: memref<1x8x1xf32, #tpu.memory_space<vmem>>) attributes {dimension_semantics = [#tpu.dimension_semantics<parallel>], iteration_bounds = array<i64: 1>, scalar_prefetch = 0 : i64, scratch_operands = 0 : i64, tpu.core_type = #tpu.core_type<tc>, window_params = [{transform_indices = @transform_0, window_bounds = array<i64: 2, 4, 290>}, {pipeline_mode = #tpu.pipeline_mode<synchronous>, transform_indices = @transform_1, window_bounds = array<i64: 9, 8, 4>}, {pipeline_mode = #tpu.pipeline_mode<synchronous>, transform_indices = @transform_2, window_bounds = array<i64: 1, 256>}, {transform_indices = @transform_3, window_bounds = array<i64: 1, 8, 1>}, {transform_indices = @transform_4, window_bounds = array<i64: 1, 8, 1>}]} {
    %c0 = arith.constant 0 : index
    %c0_0 = arith.constant 0 : index
    %c0_1 = arith.constant 0 : index
    %0 = vector.load %arg2[%c0, %c0_0, %c0_1] : memref<9x8x4xf32, #tpu.memory_space<vmem>>, vector<9x8x4xf32>
    %cst = arith.constant 0.000000e+00 : f32
    %1 = vector.broadcast %cst : f32 to vector<2x8x256xf32>
    %c0_2 = arith.constant 0 : index
    %c0_3 = arith.constant 0 : index
    %c0_4 = arith.constant 0 : index
    %2 = vector.load %arg1[%c0_2, %c0_3, %c0_4] : memref<2x4x290xf32, #tpu.memory_space<vmem>>, vector<2x4x256xf32>
    %3 = vector.extract_strided_slice %0 {offsets = [0, 0, 0], sizes = [1, 8, 4], strides = [1, 1, 1]} : vector<9x8x4xf32> to vector<1x8x4xf32>
    %4 = vector.shape_cast %3 : vector<1x8x4xf32> to vector<8x4xf32>
    %5 = vector.shape_cast %4 : vector<8x4xf32> to vector<1x8x4xf32>
    %6 = vector.broadcast %5 : vector<1x8x4xf32> to vector<2x8x4xf32>
    %cst_5 = arith.constant dense<0.000000e+00> : vector<2x8x256xf32>
    %7 = tpu.matmul %6, %2, %cst_5 {dimension_numbers = #tpu.dot_dimension_numbers<[2], [1], [1], [2], [0, 0, 0, 1, 1, 2], [0], [0]>} : vector<2x8x4xf32>, vector<2x4x256xf32>, vector<2x8x256xf32> -> vector<2x8x256xf32>
    %8 = arith.addf %1, %7 : vector<2x8x256xf32>
    %c0_6 = arith.constant 0 : index
    %c0_7 = arith.constant 0 : index
    %c1 = arith.constant 1 : index
    %9 = vector.load %arg1[%c0_6, %c0_7, %c1] : memref<2x4x290xf32, #tpu.memory_space<vmem>>, vector<2x4x256xf32>
    %10 = vector.extract_strided_slice %0 {offsets = [1, 0, 0], sizes = [1, 8, 4], strides = [1, 1, 1]} : vector<9x8x4xf32> to vector<1x8x4xf32>
    %11 = vector.shape_cast %10 : vector<1x8x4xf32> to vector<8x4xf32>
    %12 = vector.shape_cast %11 : vector<8x4xf32> to vector<1x8x4xf32>
    %13 = vector.broadcast %12 : vector<1x8x4xf32> to vector<2x8x4xf32>
    %cst_8 = arith.constant dense<0.000000e+00> : vector<2x8x256xf32>
    %14 = tpu.matmul %13, %9, %cst_8 {dimension_numbers = #tpu.dot_dimension_numbers<[2], [1], [1], [2], [0, 0, 0, 1, 1, 2], [0], [0]>} : vector<2x8x4xf32>, vector<2x4x256xf32>, vector<2x8x256xf32> -> vector<2x8x256xf32>
    %15 = arith.addf %8, %14 : vector<2x8x256xf32>
    %c0_9 = arith.constant 0 : index
    %c0_10 = arith.constant 0 : index
    %c2 = arith.constant 2 : index
    %16 = vector.load %arg1[%c0_9, %c0_10, %c2] : memref<2x4x290xf32, #tpu.memory_space<vmem>>, vector<2x4x256xf32>
    %17 = vector.extract_strided_slice %0 {offsets = [2, 0, 0], sizes = [1, 8, 4], strides = [1, 1, 1]} : vector<9x8x4xf32> to vector<1x8x4xf32>
    %18 = vector.shape_cast %17 : vector<1x8x4xf32> to vector<8x4xf32>
    %19 = vector.shape_cast %18 : vector<8x4xf32> to vector<1x8x4xf32>
    %20 = vector.broadcast %19 : vector<1x8x4xf32> to vector<2x8x4xf32>
    %cst_11 = arith.constant dense<0.000000e+00> : vector<2x8x256xf32>
    %21 = tpu.matmul %20, %16, %cst_11 {dimension_numbers = #tpu.dot_dimension_numbers<[2], [1], [1], [2], [0, 0, 0, 1, 1, 2], [0], [0]>} : vector<2x8x4xf32>, vector<2x4x256xf32>, vector<2x8x256xf32> -> vector<2x8x256xf32>
    %22 = arith.addf %15, %21 : vector<2x8x256xf32>
    %c0_12 = arith.constant 0 : index
    %c0_13 = arith.constant 0 : index
    %c16 = arith.constant 16 : index
    %23 = vector.load %arg1[%c0_12, %c0_13, %c16] : memref<2x4x290xf32, #tpu.memory_space<vmem>>, vector<2x4x256xf32>
    %24 = vector.extract_strided_slice %0 {offsets = [3, 0, 0], sizes = [1, 8, 4], strides = [1, 1, 1]} : vector<9x8x4xf32> to vector<1x8x4xf32>
    %25 = vector.shape_cast %24 : vector<1x8x4xf32> to vector<8x4xf32>
    %26 = vector.shape_cast %25 : vector<8x4xf32> to vector<1x8x4xf32>
    %27 = vector.broadcast %26 : vector<1x8x4xf32> to vector<2x8x4xf32>
    %cst_14 = arith.constant dense<0.000000e+00> : vector<2x8x256xf32>
    %28 = tpu.matmul %27, %23, %cst_14 {dimension_numbers = #tpu.dot_dimension_numbers<[2], [1], [1], [2], [0, 0, 0, 1, 1, 2], [0], [0]>} : vector<2x8x4xf32>, vector<2x4x256xf32>, vector<2x8x256xf32> -> vector<2x8x256xf32>
    %29 = arith.addf %22, %28 : vector<2x8x256xf32>
    %c0_15 = arith.constant 0 : index
    %c0_16 = arith.constant 0 : index
    %c17 = arith.constant 17 : index
    %30 = vector.load %arg1[%c0_15, %c0_16, %c17] : memref<2x4x290xf32, #tpu.memory_space<vmem>>, vector<2x4x256xf32>
    %31 = vector.extract_strided_slice %0 {offsets = [4, 0, 0], sizes = [1, 8, 4], strides = [1, 1, 1]} : vector<9x8x4xf32> to vector<1x8x4xf32>
    %32 = vector.shape_cast %31 : vector<1x8x4xf32> to vector<8x4xf32>
    %33 = vector.shape_cast %32 : vector<8x4xf32> to vector<1x8x4xf32>
    %34 = vector.broadcast %33 : vector<1x8x4xf32> to vector<2x8x4xf32>
    %cst_17 = arith.constant dense<0.000000e+00> : vector<2x8x256xf32>
    %35 = tpu.matmul %34, %30, %cst_17 {dimension_numbers = #tpu.dot_dimension_numbers<[2], [1], [1], [2], [0, 0, 0, 1, 1, 2], [0], [0]>} : vector<2x8x4xf32>, vector<2x4x256xf32>, vector<2x8x256xf32> -> vector<2x8x256xf32>
    %36 = arith.addf %29, %35 : vector<2x8x256xf32>
    %c0_18 = arith.constant 0 : index
    %c0_19 = arith.constant 0 : index
    %c18 = arith.constant 18 : index
    %37 = vector.load %arg1[%c0_18, %c0_19, %c18] : memref<2x4x290xf32, #tpu.memory_space<vmem>>, vector<2x4x256xf32>
    %38 = vector.extract_strided_slice %0 {offsets = [5, 0, 0], sizes = [1, 8, 4], strides = [1, 1, 1]} : vector<9x8x4xf32> to vector<1x8x4xf32>
    %39 = vector.shape_cast %38 : vector<1x8x4xf32> to vector<8x4xf32>
    %40 = vector.shape_cast %39 : vector<8x4xf32> to vector<1x8x4xf32>
    %41 = vector.broadcast %40 : vector<1x8x4xf32> to vector<2x8x4xf32>
    %cst_20 = arith.constant dense<0.000000e+00> : vector<2x8x256xf32>
    %42 = tpu.matmul %41, %37, %cst_20 {dimension_numbers = #tpu.dot_dimension_numbers<[2], [1], [1], [2], [0, 0, 0, 1, 1, 2], [0], [0]>} : vector<2x8x4xf32>, vector<2x4x256xf32>, vector<2x8x256xf32> -> vector<2x8x256xf32>
    %43 = arith.addf %36, %42 : vector<2x8x256xf32>
    %c0_21 = arith.constant 0 : index
    %c0_22 = arith.constant 0 : index
    %c32 = arith.constant 32 : index
    %44 = vector.load %arg1[%c0_21, %c0_22, %c32] : memref<2x4x290xf32, #tpu.memory_space<vmem>>, vector<2x4x256xf32>
    %45 = vector.extract_strided_slice %0 {offsets = [6, 0, 0], sizes = [1, 8, 4], strides = [1, 1, 1]} : vector<9x8x4xf32> to vector<1x8x4xf32>
    %46 = vector.shape_cast %45 : vector<1x8x4xf32> to vector<8x4xf32>
    %47 = vector.shape_cast %46 : vector<8x4xf32> to vector<1x8x4xf32>
    %48 = vector.broadcast %47 : vector<1x8x4xf32> to vector<2x8x4xf32>
    %cst_23 = arith.constant dense<0.000000e+00> : vector<2x8x256xf32>
    %49 = tpu.matmul %48, %44, %cst_23 {dimension_numbers = #tpu.dot_dimension_numbers<[2], [1], [1], [2], [0, 0, 0, 1, 1, 2], [0], [0]>} : vector<2x8x4xf32>, vector<2x4x256xf32>, vector<2x8x256xf32> -> vector<2x8x256xf32>
    %50 = arith.addf %43, %49 : vector<2x8x256xf32>
    %c0_24 = arith.constant 0 : index
    %c0_25 = arith.constant 0 : index
    %c33 = arith.constant 33 : index
    %51 = vector.load %arg1[%c0_24, %c0_25, %c33] : memref<2x4x290xf32, #tpu.memory_space<vmem>>, vector<2x4x256xf32>
    %52 = vector.extract_strided_slice %0 {offsets = [7, 0, 0], sizes = [1, 8, 4], strides = [1, 1, 1]} : vector<9x8x4xf32> to vector<1x8x4xf32>
    %53 = vector.shape_cast %52 : vector<1x8x4xf32> to vector<8x4xf32>
    %54 = vector.shape_cast %53 : vector<8x4xf32> to vector<1x8x4xf32>
    %55 = vector.broadcast %54 : vector<1x8x4xf32> to vector<2x8x4xf32>
    %cst_26 = arith.constant dense<0.000000e+00> : vector<2x8x256xf32>
    %56 = tpu.matmul %55, %51, %cst_26 {dimension_numbers = #tpu.dot_dimension_numbers<[2], [1], [1], [2], [0, 0, 0, 1, 1, 2], [0], [0]>} : vector<2x8x4xf32>, vector<2x4x256xf32>, vector<2x8x256xf32> -> vector<2x8x256xf32>
    %57 = arith.addf %50, %56 : vector<2x8x256xf32>
    %c0_27 = arith.constant 0 : index
    %c0_28 = arith.constant 0 : index
    %c34 = arith.constant 34 : index
    %58 = vector.load %arg1[%c0_27, %c0_28, %c34] : memref<2x4x290xf32, #tpu.memory_space<vmem>>, vector<2x4x256xf32>
    %59 = vector.extract_strided_slice %0 {offsets = [8, 0, 0], sizes = [1, 8, 4], strides = [1, 1, 1]} : vector<9x8x4xf32> to vector<1x8x4xf32>
    %60 = vector.shape_cast %59 : vector<1x8x4xf32> to vector<8x4xf32>
    %61 = vector.shape_cast %60 : vector<8x4xf32> to vector<1x8x4xf32>
    %62 = vector.broadcast %61 : vector<1x8x4xf32> to vector<2x8x4xf32>
    %cst_29 = arith.constant dense<0.000000e+00> : vector<2x8x256xf32>
    %63 = tpu.matmul %62, %58, %cst_29 {dimension_numbers = #tpu.dot_dimension_numbers<[2], [1], [1], [2], [0, 0, 0, 1, 1, 2], [0], [0]>} : vector<2x8x4xf32>, vector<2x4x256xf32>, vector<2x8x256xf32> -> vector<2x8x256xf32>
    %64 = arith.addf %57, %63 : vector<2x8x256xf32>
    %c0_30 = arith.constant 0 : index
    %c0_31 = arith.constant 0 : index
    %65 = vector.load %arg3[%c0_30, %c0_31] : memref<1x256xf32, #tpu.memory_space<vmem>>, vector<1x256xf32>
    %66 = vector.shape_cast %65 : vector<1x256xf32> to vector<1x1x256xf32>
    %67 = vector.broadcast %66 : vector<1x1x256xf32> to vector<2x8x256xf32>
    %68 = arith.mulf %64, %67 : vector<2x8x256xf32>
    %cst_32 = arith.constant dense<0.000000e+00> : vector<8x256xf32>
    %69 = vector.multi_reduction <add>, %68, %cst_32 [0] : vector<2x8x256xf32> to vector<8x256xf32>
    %70 = arith.mulf %68, %64 : vector<2x8x256xf32>
    %cst_33 = arith.constant dense<0.000000e+00> : vector<8x256xf32>
    %71 = vector.multi_reduction <add>, %70, %cst_33 [0] : vector<2x8x256xf32> to vector<8x256xf32>
    %cst_34 = arith.constant dense<0.000000e+00> : vector<8xf32>
    %72 = vector.multi_reduction <add>, %69, %cst_34 [1] : vector<8x256xf32> to vector<8xf32>
    %73 = vector.shape_cast %72 : vector<8xf32> to vector<8x1xf32>
    %c0_35 = arith.constant 0 : index
    %c0_36 = arith.constant 0 : index
    %c0_37 = arith.constant 0 : index
    %74 = vector.load %arg4[%c0_35, %c0_36, %c0_37] : memref<1x8x1xf32, #tpu.memory_space<vmem>>, vector<1x8x1xf32>
    %75 = vector.shape_cast %74 : vector<1x8x1xf32> to vector<8x1xf32>
    %76 = vector.shape_cast %73 : vector<8x1xf32> to vector<1x8x1xf32>
    tpu.vector_store %arg4[%c0_35, %c0_36, %c0_37], %76 {strides = array<i32>} : memref<1x8x1xf32, #tpu.memory_space<vmem>>, vector<1x8x1xf32>,
    %cst_38 = arith.constant dense<0.000000e+00> : vector<8xf32>
    %77 = vector.multi_reduction <add>, %71, %cst_38 [1] : vector<8x256xf32> to vector<8xf32>
    %78 = vector.shape_cast %77 : vector<8xf32> to vector<8x1xf32>
    %c0_39 = arith.constant 0 : index
    %c0_40 = arith.constant 0 : index
    %c0_41 = arith.constant 0 : index
    %79 = vector.load %arg5[%c0_39, %c0_40, %c0_41] : memref<1x8x1xf32, #tpu.memory_space<vmem>>, vector<1x8x1xf32>
    %80 = vector.shape_cast %79 : vector<1x8x1xf32> to vector<8x1xf32>
    %81 = vector.shape_cast %78 : vector<8x1xf32> to vector<1x8x1xf32>
    tpu.vector_store %arg5[%c0_39, %c0_40, %c0_41], %81 {strides = array<i32>} : memref<1x8x1xf32, #tpu.memory_space<vmem>>, vector<1x8x1xf32>,
    return
  }
  func.func @transform_0(%arg0: i32) -> (i32, i32, i32) {
    %c0_i32 = arith.constant 0 : i32
    %c0_i32_0 = arith.constant 0 : i32
    %c0_i32_1 = arith.constant 0 : i32
    return %arg0, %c0_i32, %c0_i32_0 : i32, i32, i32
  }
  func.func @transform_1(%arg0: i32) -> (i32, i32, i32) {
    %c0_i32 = arith.constant 0 : i32
    %c0_i32_0 = arith.constant 0 : i32
    %c0_i32_1 = arith.constant 0 : i32
    %c0_i32_2 = arith.constant 0 : i32
    return %c0_i32, %c0_i32_0, %c0_i32_1 : i32, i32, i32
  }
  func.func @transform_2(%arg0: i32) -> (i32, i32) {
    %c0_i32 = arith.constant 0 : i32
    %c0_i32_0 = arith.constant 0 : i32
    %c0_i32_1 = arith.constant 0 : i32
    return %c0_i32, %c0_i32_0 : i32, i32
  }
  func.func @transform_3(%arg0: i32) -> (i32, i32, i32) {
    %c0_i32 = arith.constant 0 : i32
    %c0_i32_0 = arith.constant 0 : i32
    %c0_i32_1 = arith.constant 0 : i32
    return %arg0, %c0_i32, %c0_i32_0 : i32, i32, i32
  }
  func.func @transform_4(%arg0: i32) -> (i32, i32, i32) {
    %c0_i32 = arith.constant 0 : i32
    %c0_i32_0 = arith.constant 0 : i32
    %c0_i32_1 = arith.constant 0 : i32
    return %arg0, %c0_i32, %c0_i32_0 : i32, i32, i32
  }
}

</mosaic_0001>

<bundles_post_ra>
// kernel: tpu_custom_call.1
= control target key start
LH: loop header
LB: loop body
LE: loop exit
PB: predicated region body
PF: predicated region fallthrough
CT: control target
= control target key end

     0   :  { %v1786_v3 = vmov 0.0   ;;  %s1787_s21 = smov 127   ;;  %s1788_s26 = smov 126   ;;  %vm38_vm0 = vcmask 1039360   ;;  %vm45_vm1 = vcmask 1043456   ;;  %vm41_vm2 = vcmask 31744   ;;  %s2058_s0 = inlined_call_operand.vmem [shape: f32[2,4,290], index: 0, kind: input, shape index: {}]   ;;  %s2059_s1 = inlined_call_operand.vmem [shape: f32[9,8,4], index: 1, kind: input, shape index: {}]   ;;  %s2060_s2 = inlined_call_operand.vmem [shape: f32[1,256], index: 2, kind: input, shape index: {}]   ;;  %s2061_s3 = inlined_call_operand.vmem [shape: f32[1,8,1], index: 3, kind: output, shape index: {0}]   ;;  %s2062_s4 = inlined_call_operand.vmem [shape: f32[1,8,1], index: 4, kind: output, shape index: {1}]  }
   0x1   :  { %v28_v0 = vld [vmem:[%s2058_s0 + $0x14] sm:$0xf]  ;;  %v27_v1 = vld [vmem:[%s2058_s0 + $0x8] sm:$0xf]  ;;  %v1829_v2 = vld [vmem:[%s2058_s0 + $0xc] sm:$0xff]  ;;  %114 = vmatprep.mubr.f32.mxu0 %v1786_v3  ;;  %200 = vmatprep.mubr.f32.mxu1 %v1786_v3  ;;  %s1789_s5 = smov 112  }
   0x2   :  { %128 = vrot.lane.b32.xlu1 %v28_v0, %s1787_s21  ;;  %36 = vrot.lane.b32.xlu0 %v27_v1, %s1787_s21  ;;  %v1835_v4 = vcombine.high %v1829_v2, %v1829_v2  ;;  %v1840_v5 = vld [vmem:[%s2058_s0] sm:$0xff]  ;;  %v361_v7 = vld [vmem:[%s2058_s0 + $0x8] sm:$0xf]  ;;  %s1790_s10 = smov 111   ;;  %s1791_s15 = smov 110   ;;  %vm373_vm3 = vcmask 1031168  }
   0x3   :  { %v1844_v6 = vcombine.high %v1840_v5, %v1840_v5  ;;  %v363_v8 = vld [vmem:[%s2058_s0 + $0x14] sm:$0xf]  ;;  %v545_v9 = vld [vmem:[%s2058_s0 + $0x8] sm:$0xf]  ;;  %s1792_s20 = smov 96   ;;  %s1793_s25 = smov 95  }
   0x4   :  { %v547_v10 = vld [vmem:[%s2058_s0 + $0x14] sm:$0xf]  ;;  %v729_v11 = vld [vmem:[%s2058_s0 + $0x8] sm:$0xf]  ;;  %s1794_s30 = smov 94   ;;  %v16_v37 = vld [vmem:[%s2059_s1] sm:$0xff] }
   0x5   :  { %v731_v12 = vld [vmem:[%s2058_s0 + $0x14] sm:$0xf]  ;;  %v913_v13 = vld [vmem:[%s2058_s0 + $0x8] sm:$0xf]  ;;  %vm557_vm4 = vcmask 916480   ;;  %v19_v52 = vld [vmem:[%s2059_s1 + $0x18] sm:$0xff] }
   0x6   :  { %126 = vrot.lane.b32.xlu1 %v1835_v4, %s1787_s21  ;;  %34 = vrot.lane.b32.xlu0 %v1844_v6, %s1787_s21  ;;  %v915_v14 = vld [vmem:[%s2058_s0 + $0x14] sm:$0xf]  ;;  %v1097_v15 = vld [vmem:[%s2058_s0 + $0x8] sm:$0xf]  ;;  %vm741_vm5 = vcmask 908288   ;;  %vm925_vm6 = vcmask 900096  }
   0x7   :  { %v1099_v16 = vld [vmem:[%s2058_s0 + $0x14] sm:$0xf]  ;;  %v1281_v17 = vld [vmem:[%s2058_s0 + $0x8] sm:$0xf]  ;;  %v20_v63 = vld [vmem:[%s2059_s1 + $0x20] sm:$0xff]  ;;  %vm1109_vm7 = vcmask 785408  }
   0x8   :  { %v1283_v18 = vld [vmem:[%s2058_s0 + $0x14] sm:$0xf]  ;;  %v1465_v19 = vld [vmem:[%s2058_s0 + $0x8] sm:$0xf]  ;;  %vm1293_vm8 = vcmask 777216   ;;  %vm1477_vm9 = vcmask 769024  }
   0x9   :  { %v1467_v20 = vld [vmem:[%s2058_s0 + $0x14] sm:$0xf]  ;;  %v17_v29 = vld [vmem:[%s2059_s1 + $0x8] sm:$0xff]  ;;  %vm1675_vm10 = vcmask 7168  }
   0xa   :  { %124 = vrot.lane.b32.xlu1 %v1829_v2, %s1787_s21  ;;  %32 = vrot.lane.b32.xlu0 %v1840_v5, %s1787_s21  ;;  %v18_v45 = vld [vmem:[%s2059_s1 + $0x10] sm:$0xff] }
   0xe   :  { %371 = vrot.lane.b32.xlu1 %v361_v7, %s1788_s26  ;;  %369 = vrot.lane.b32.xlu0 %v1844_v6, %s1788_s26 }
  0x12   :  { %461 = vrot.lane.b32.xlu1 %v363_v8, %s1788_s26  ;;  %459 = vrot.lane.b32.xlu0 %v1835_v4, %s1788_s26 }
  0x16   :  { %457 = vrot.lane.b32.xlu1 %v1829_v2, %s1788_s26  ;;  %367 = vrot.lane.b32.xlu0 %v1840_v5, %s1788_s26 }
  0x1a   :  { %555 = vrot.lane.b32.xlu1 %v545_v9, %s1789_s5  ;;  %553 = vrot.lane.b32.xlu0 %v1844_v6, %s1789_s5 }
  0x1e   :  { %645 = vrot.lane.b32.xlu1 %v547_v10, %s1789_s5  ;;  %643 = vrot.lane.b32.xlu0 %v1835_v4, %s1789_s5 }
  0x22   :  { %641 = vrot.lane.b32.xlu1 %v1829_v2, %s1789_s5  ;;  %551 = vrot.lane.b32.xlu0 %v1840_v5, %s1789_s5 }
  0x26   :  { %739 = vrot.lane.b32.xlu1 %v729_v11, %s1790_s10  ;;  %737 = vrot.lane.b32.xlu0 %v1844_v6, %s1790_s10  ;;  %v21_v11 = vld [vmem:[%s2059_s1 + $0x28] sm:$0xff] }
  0x2a   :  { %829 = vrot.lane.b32.xlu1 %v731_v12, %s1790_s10  ;;  %827 = vrot.lane.b32.xlu0 %v1835_v4, %s1790_s10 }
  0x2e   :  { %825 = vrot.lane.b32.xlu1 %v1829_v2, %s1790_s10  ;;  %735 = vrot.lane.b32.xlu0 %v1840_v5, %s1790_s10 }
  0x32   :  { %923 = vrot.lane.b32.xlu1 %v913_v13, %s1791_s15  ;;  %921 = vrot.lane.b32.xlu0 %v1844_v6, %s1791_s15 }
  0x36   :  { %1013 = vrot.lane.b32.xlu1 %v915_v14, %s1791_s15  ;;  %1011 = vrot.lane.b32.xlu0 %v1835_v4, %s1791_s15 }
  0x3a   :  { %1009 = vrot.lane.b32.xlu1 %v1829_v2, %s1791_s15  ;;  %919 = vrot.lane.b32.xlu0 %v1840_v5, %s1791_s15 }
  0x3e   :  { %1107 = vrot.lane.b32.xlu1 %v1097_v15, %s1792_s20  ;;  %1105 = vrot.lane.b32.xlu0 %v1844_v6, %s1792_s20 }
  0x42   :  { %1197 = vrot.lane.b32.xlu1 %v1099_v16, %s1792_s20  ;;  %1195 = vrot.lane.b32.xlu0 %v1835_v4, %s1792_s20 }
  0x46   :  { %1193 = vrot.lane.b32.xlu1 %v1829_v2, %s1792_s20  ;;  %1103 = vrot.lane.b32.xlu0 %v1840_v5, %s1792_s20 }
  0x4a   :  { %1291 = vrot.lane.b32.xlu1 %v1281_v17, %s1793_s25  ;;  %1289 = vrot.lane.b32.xlu0 %v1844_v6, %s1793_s25 }
  0x4e   :  { %1381 = vrot.lane.b32.xlu1 %v1283_v18, %s1793_s25  ;;  %1379 = vrot.lane.b32.xlu0 %v1835_v4, %s1793_s25 }
  0x52   :  { %1377 = vrot.lane.b32.xlu1 %v1829_v2, %s1793_s25  ;;  %1287 = vrot.lane.b32.xlu0 %v1840_v5, %s1793_s25 }
  0x56   :  { %1475 = vrot.lane.b32.xlu1 %v1465_v19, %s1794_s30  ;;  %1473 = vrot.lane.b32.xlu0 %v1844_v6, %s1794_s30 }
  0x5a   :  { %1565 = vrot.lane.b32.xlu1 %v1467_v20, %s1794_s30  ;;  %1563 = vrot.lane.b32.xlu0 %v1835_v4, %s1794_s30 }
  0x5e   :  { %1561 = vrot.lane.b32.xlu1 %v1829_v2, %s1794_s30  ;;  %1471 = vrot.lane.b32.xlu0 %v1840_v5, %s1794_s30 }
  0x74   :  { %v129_v21 = vpop.permute.xlu1 %128  ;;  %v37_v22 = vpop.permute.xlu0 %36 }
  0x78   :  { %v127_v23 = vpop.permute.xlu1 %126  ;;  %v35_v24 = vpop.permute.xlu0 %34 }
  0x79   :  { %v40_v25 = vsel %vm38_vm0, %v35_v24, %v37_v22  ;;  %v131_v26 = vsel %vm38_vm0, %v127_v23, %v129_v21  ;;  %v22_v22 = vld [vmem:[%s2059_s1 + $0x30] sm:$0xff] }
  0x7a   :  { %1689 = vmatprep.subr.msk.mxu0 %vm45_vm1, %v40_v25  ;;  %1692 = vmatprep.subr.msk.mxu1 %vm45_vm1, %v131_v26 }
  0x7c   :  { %v125_v27 = vpop.permute.xlu1 %124  ;;  %v33_v28 = vpop.permute.xlu0 %32 }
  0x7d   :  { %v39_v30 = vsel %vm38_vm0, %v33_v28, %v35_v24  ;;  %v130_v31 = vsel %vm38_vm0, %v125_v27, %v127_v23 }
  0x7e   :  { %1690 = vmatpush1.msk.msra.mxu0 %vm45_vm1, %v39_v30  ;;  %1693 = vmatpush1.msk.msra.mxu1 %vm45_vm1, %v130_v31 }
  0x7f   :  { %1695 = vmatprep.subr.msk.mxu0 %vm45_vm1, %v1844_v6  ;;  %1691 = vmatmul.mubr.msk.f32.vlgmr.msra.gmra.mrb[0].mxu0 %vm41_vm2, %v17_v29 }
  0x80   :  { %v372_v32 = vpop.permute.xlu1 %371  ;;  %v370_v33 = vpop.permute.xlu0 %369  ;;  %1696 = vmatpush1.msk.msra.mxu0 %vm45_vm1, %v1840_v5  ;;  %1694 = vmatmul.mubr.msk.f32.vlgmr.msra.gmra.mrb[0].mxu1 %vm41_vm2, %v17_v29 }
  0x81   :  { %v375_v34 = vsel %vm373_vm3, %v370_v33, %v372_v32  ;;  %1698 = vmatprep.subr.msk.mxu1 %vm45_vm1, %v1835_v4  ;;  %278 = vmatprep.mubr.f32.mxu0 %v1786_v3 }
  0x82   :  { %1701 = vmatprep.subr.msk.mxu0 %vm45_vm1, %v375_v34  ;;  %1699 = vmatpush1.msk.msra.mxu1 %vm45_vm1, %v1829_v2 }
  0x83   :  { %353 = vmatprep.mubr.f32.mxu1 %v1786_v3 }
  0x84   :  { %v462_v35 = vpop.permute.xlu1 %461  ;;  %v460_v36 = vpop.permute.xlu0 %459 }
  0x85   :  { %v464_v38 = vsel %vm373_vm3, %v460_v36, %v462_v35 }
  0x86   :  { %1704 = vmatprep.subr.msk.mxu1 %vm45_vm1, %v464_v38 }
  0x87   :  { %1697 = vmatmul.mubr.msk.f32.vlgmr.msra.gmra.mrb[0].mxu0 %vm41_vm2, %v16_v37 }
  0x88   :  { %v458_v39 = vpop.permute.xlu1 %457  ;;  %v368_v40 = vpop.permute.xlu0 %367  ;;  %1700 = vmatmul.mubr.msk.f32.vlgmr.msra.gmra.mrb[0].mxu1 %vm41_vm2, %v16_v37  ;;  %447 = vmatprep.mubr.f32.mxu0 %v1786_v3 }
  0x89   :  { %v463_v41 = vsel %vm373_vm3, %v458_v39, %v460_v36  ;;  %v374_v42 = vsel %vm373_vm3, %v368_v40, %v370_v33  ;;  %533 = vmatprep.mubr.f32.mxu1 %v1786_v3  ;;  %v23_v33 = vld [vmem:[%s2059_s1 + $0x38] sm:$0xff] }
  0x8a   :  { %1702 = vmatpush1.msk.msra.mxu0 %vm45_vm1, %v374_v42  ;;  %1705 = vmatpush1.msk.msra.mxu1 %vm45_vm1, %v463_v41 }
  0x8c   :  { %v556_v43 = vpop.permute.xlu1 %555  ;;  %v554_v44 = vpop.permute.xlu0 %553 }
  0x8d   :  { %v559_v46 = vsel %vm557_vm4, %v554_v44, %v556_v43 }
  0x8e   :  { %1707 = vmatprep.subr.msk.mxu0 %vm45_vm1, %v559_v46  ;;  %v1650_v46 = vlaneseq }
  0x8f   :  { %1703 = vmatmul.mubr.msk.f32.vlgmr.msra.gmra.mrb[0].mxu0 %vm41_vm2, %v18_v45 }
  0x90   :  { %v646_v47 = vpop.permute.xlu1 %645  ;;  %v644_v48 = vpop.permute.xlu0 %643  ;;  %1706 = vmatmul.mubr.msk.f32.vlgmr.msra.gmra.mrb[0].mxu1 %vm41_vm2, %v18_v45  ;;  %631 = vmatprep.mubr.f32.mxu0 %v1786_v3 }
  0x91   :  { %v648_v49 = vsel %vm557_vm4, %v644_v48, %v646_v47  ;;  %717 = vmatprep.mubr.f32.mxu1 %v1786_v3  ;;  %v1651_v47 = vshrl.u32 %v1650_v46, 7 }
  0x92   :  { %1710 = vmatprep.subr.msk.mxu1 %vm45_vm1, %v648_v49  ;;  %v1648_v49 = vld [vmem:[%s2060_s2] sm:$0x3] }
  0x94   :  { %v642_v50 = vpop.permute.xlu1 %641  ;;  %v552_v51 = vpop.permute.xlu0 %551 }
  0x95   :  { %v647_v53 = vsel %vm557_vm4, %v642_v50, %v644_v48  ;;  %v558_v54 = vsel %vm557_vm4, %v552_v51, %v554_v44  ;;  %v24_v44 = vld [vmem:[%s2059_s1 + $0x40] sm:$0xff]  ;;  %v1652_v48 = vsub.s32 0, %v1651_v47  ;;  %v1656_v50 = vsub.s32 1, %v1651_v47 }
  0x96   :  { %1708 = vmatpush1.msk.msra.mxu0 %vm45_vm1, %v558_v54  ;;  %1711 = vmatpush1.msk.msra.mxu1 %vm45_vm1, %v647_v53 }
  0x97   :  { %1709 = vmatmul.mubr.msk.f32.vlgmr.msra.gmra.mrb[0].mxu0 %vm41_vm2, %v19_v52  ;;  %v1653_v51 = vrot.slane %v1648_v49, %v1652_v48 }
  0x98   :  { %v740_v55 = vpop.permute.xlu1 %739  ;;  %v738_v56 = vpop.permute.xlu0 %737  ;;  %1712 = vmatmul.mubr.msk.f32.vlgmr.msra.gmra.mrb[0].mxu1 %vm41_vm2, %v19_v52  ;;  %815 = vmatprep.mubr.f32.mxu0 %v1786_v3  ;;  %v1657_v52 = vrot.slane %v1648_v49, %v1656_v50 }
  0x99   :  { %v743_v57 = vsel %vm741_vm5, %v738_v56, %v740_v55  ;;  %901 = vmatprep.mubr.f32.mxu1 %v1786_v3 }
  0x9a   :  { %1713 = vmatprep.subr.msk.mxu0 %vm45_vm1, %v743_v57 }
  0x9c   :  { %v830_v58 = vpop.permute.xlu1 %829  ;;  %v828_v59 = vpop.permute.xlu0 %827 }
  0x9d   :  { %v832_v60 = vsel %vm741_vm5, %v828_v59, %v830_v58 }
  0x9e   :  { %1716 = vmatprep.subr.msk.mxu1 %vm45_vm1, %v832_v60 }
  0xa0   :  { %v826_v61 = vpop.permute.xlu1 %825  ;;  %v736_v62 = vpop.permute.xlu0 %735 }
  0xa1   :  { %v831_v0 = vsel %vm741_vm5, %v826_v61, %v828_v59  ;;  %v742_v1 = vsel %vm741_vm5, %v736_v62, %v738_v56 }
  0xa2   :  { %1714 = vmatpush1.msk.msra.mxu0 %vm45_vm1, %v742_v1  ;;  %1717 = vmatpush1.msk.msra.mxu1 %vm45_vm1, %v831_v0 }
  0xa3   :  { %1715 = vmatmul.mubr.msk.f32.vlgmr.msra.gmra.mrb[0].mxu0 %vm41_vm2, %v20_v63  ;;  %1718 = vmatmul.mubr.msk.f32.vlgmr.msra.gmra.mrb[0].mxu1 %vm41_vm2, %v20_v63 }
  0xa4   :  { %v924_v2 = vpop.permute.xlu1 %923  ;;  %v922_v4 = vpop.permute.xlu0 %921  ;;  %999 = vmatprep.mubr.f32.mxu0 %v1786_v3  ;;  %1085 = vmatprep.mubr.f32.mxu1 %v1786_v3 }
  0xa5   :  { %v927_v5 = vsel %vm925_vm6, %v922_v4, %v924_v2 }
  0xa6   :  { %1719 = vmatprep.subr.msk.mxu0 %vm45_vm1, %v927_v5 }
  0xa8   :  { %v1014_v6 = vpop.permute.xlu1 %1013  ;;  %v1012_v7 = vpop.permute.xlu0 %1011 }
  0xa9   :  { %v1016_v8 = vsel %vm925_vm6, %v1012_v7, %v1014_v6 }
  0xaa   :  { %1722 = vmatprep.subr.msk.mxu1 %vm45_vm1, %v1016_v8 }
  0xac   :  { %v1010_v9 = vpop.permute.xlu1 %1009  ;;  %v920_v10 = vpop.permute.xlu0 %919 }
  0xad   :  { %v1015_v12 = vsel %vm925_vm6, %v1010_v9, %v1012_v7  ;;  %v926_v13 = vsel %vm925_vm6, %v920_v10, %v922_v4 }
  0xae   :  { %1720 = vmatpush1.msk.msra.mxu0 %vm45_vm1, %v926_v13  ;;  %1723 = vmatpush1.msk.msra.mxu1 %vm45_vm1, %v1015_v12 }
  0xaf   :  { %1721 = vmatmul.mubr.msk.f32.vlgmr.msra.gmra.mrb[0].mxu0 %vm41_vm2, %v21_v11  ;;  %1724 = vmatmul.mubr.msk.f32.vlgmr.msra.gmra.mrb[0].mxu1 %vm41_vm2, %v21_v11 }
  0xb0   :  { %v1108_v14 = vpop.permute.xlu1 %1107  ;;  %v1106_v15 = vpop.permute.xlu0 %1105  ;;  %1183 = vmatprep.mubr.f32.mxu0 %v1786_v3  ;;  %1269 = vmatprep.mubr.f32.mxu1 %v1786_v3 }
  0xb1   :  { %v1111_v16 = vsel %vm1109_vm7, %v1106_v15, %v1108_v14 }
  0xb2   :  { %1725 = vmatprep.subr.msk.mxu0 %vm45_vm1, %v1111_v16 }
  0xb4   :  { %v1198_v17 = vpop.permute.xlu1 %1197  ;;  %v1196_v18 = vpop.permute.xlu0 %1195 }
  0xb5   :  { %v1200_v19 = vsel %vm1109_vm7, %v1196_v18, %v1198_v17 }
  0xb6   :  { %1728 = vmatprep.subr.msk.mxu1 %vm45_vm1, %v1200_v19 }
  0xb8   :  { %v1194_v20 = vpop.permute.xlu1 %1193  ;;  %v1104_v21 = vpop.permute.xlu0 %1103 }
  0xb9   :  { %v1199_v23 = vsel %vm1109_vm7, %v1194_v20, %v1196_v18  ;;  %v1110_v24 = vsel %vm1109_vm7, %v1104_v21, %v1106_v15 }
  0xba   :  { %1726 = vmatpush1.msk.msra.mxu0 %vm45_vm1, %v1110_v24  ;;  %1729 = vmatpush1.msk.msra.mxu1 %vm45_vm1, %v1199_v23 }
  0xbb   :  { %1727 = vmatmul.mubr.msk.f32.vlgmr.msra.gmra.mrb[0].mxu0 %vm41_vm2, %v22_v22  ;;  %1730 = vmatmul.mubr.msk.f32.vlgmr.msra.gmra.mrb[0].mxu1 %vm41_vm2, %v22_v22 }
  0xbc   :  { %v1292_v25 = vpop.permute.xlu1 %1291  ;;  %v1290_v26 = vpop.permute.xlu0 %1289  ;;  %1367 = vmatprep.mubr.f32.mxu0 %v1786_v3  ;;  %1453 = vmatprep.mubr.f32.mxu1 %v1786_v3 }
  0xbd   :  { %v1295_v27 = vsel %vm1293_vm8, %v1290_v26, %v1292_v25 }
  0xbe   :  { %1731 = vmatprep.subr.msk.mxu0 %vm45_vm1, %v1295_v27 }
  0xc0   :  { %v1382_v28 = vpop.permute.xlu1 %1381  ;;  %v1380_v29 = vpop.permute.xlu0 %1379 }
  0xc1   :  { %v1384_v30 = vsel %vm1293_vm8, %v1380_v29, %v1382_v28 }
  0xc2   :  { %1734 = vmatprep.subr.msk.mxu1 %vm45_vm1, %v1384_v30 }
  0xc4   :  { %v1378_v31 = vpop.permute.xlu1 %1377  ;;  %v1288_v32 = vpop.permute.xlu0 %1287 }
  0xc5   :  { %v1383_v34 = vsel %vm1293_vm8, %v1378_v31, %v1380_v29  ;;  %v1294_v35 = vsel %vm1293_vm8, %v1288_v32, %v1290_v26 }
  0xc6   :  { %1732 = vmatpush1.msk.msra.mxu0 %vm45_vm1, %v1294_v35  ;;  %1735 = vmatpush1.msk.msra.mxu1 %vm45_vm1, %v1383_v34 }
  0xc7   :  { %1733 = vmatmul.mubr.msk.f32.vlgmr.msra.gmra.mrb[0].mxu0 %vm41_vm2, %v23_v33  ;;  %1736 = vmatmul.mubr.msk.f32.vlgmr.msra.gmra.mrb[0].mxu1 %vm41_vm2, %v23_v33 }
  0xc8   :  { %v1476_v36 = vpop.permute.xlu1 %1475  ;;  %v1474_v37 = vpop.permute.xlu0 %1473  ;;  %1551 = vmatprep.mubr.f32.mxu0 %v1786_v3  ;;  %1637 = vmatprep.mubr.f32.mxu1 %v1786_v3 }
  0xc9   :  { %v1479_v38 = vsel %vm1477_vm9, %v1474_v37, %v1476_v36 }
  0xca   :  { %1737 = vmatprep.subr.msk.mxu0 %vm45_vm1, %v1479_v38 }
  0xcc   :  { %v1566_v39 = vpop.permute.xlu1 %1565  ;;  %v1564_v40 = vpop.permute.xlu0 %1563 }
  0xcd   :  { %v1568_v41 = vsel %vm1477_vm9, %v1564_v40, %v1566_v39 }
  0xce   :  { %1740 = vmatprep.subr.msk.mxu1 %vm45_vm1, %v1568_v41 }
  0xd0   :  { %v1562_v42 = vpop.permute.xlu1 %1561  ;;  %v1472_v43 = vpop.permute.xlu0 %1471 }
  0xd1   :  { %v1567_v45 = vsel %vm1477_vm9, %v1562_v42, %v1564_v40  ;;  %v1478_v3 = vsel %vm1477_vm9, %v1472_v43, %v1474_v37 }
  0xd2   :  { %1738 = vmatpush1.msk.msra.mxu0 %vm45_vm1, %v1478_v3  ;;  %1741 = vmatpush1.msk.msra.mxu1 %vm45_vm1, %v1567_v45 }
  0xd3   :  { %1739 = vmatmul.mubr.msk.f32.vlgmr.msra.gmra.mrb[0].mxu0 %vm41_vm2, %v24_v44  ;;  %1742 = vmatmul.mubr.msk.f32.vlgmr.msra.gmra.mrb[0].mxu1 %vm41_vm2, %v24_v44 }
 0x1a6   :  { %v1553_v53 = vpop.f32.mrb[0].mxu0  ;;  %v1639_v54 = vpop.f32.mrb[0].mxu1 }
 0x1a7   :  { %v1660_v55 = vmul.f32 %v1653_v51, %v1553_v53  ;;  %v1662_v56 = vmul.f32 %v1653_v51, %v1639_v54  ;;  %v1555_v57 = vpop.f32.mrb[1].mxu0  ;;  %v1641_v58 = vpop.f32.mrb[1].mxu1 }
 0x1a8   :  { %v1661_v59 = vmul.f32 %v1657_v52, %v1555_v57  ;;  %v1663_v60 = vmul.f32 %v1657_v52, %v1641_v58 }
 0x1a9   :  { %v1666_v61 = vmul.f32 %v1660_v55, %v1553_v53  ;;  %v1668_v62 = vmul.f32 %v1662_v56, %v1639_v54  ;;  %v1664_v63 = vadd.f32 %v1662_v56, %v1660_v55 }
 0x1aa   :  { %v1667_v0 = vmul.f32 %v1661_v59, %v1555_v57  ;;  %v1665_v1 = vadd.f32 %v1663_v60, %v1661_v59  ;;  %v1669_v2 = vmul.f32 %v1663_v60, %v1641_v58 }
 0x1ab   :  { %v1670_v4 = vadd.f32 %v1668_v62, %v1666_v61 }
 0x1ac   :  { %v1671_v5 = vadd.f32 %v1669_v2, %v1667_v0  ;;  %v1672_v6 = vadd.f32 %v1665_v1, %v1664_v63 }
 0x1ae   :  { %1673 = vadd.xlane.f32.xlu0 %v1672_v6  ;;  %v1677_v7 = vadd.f32 %v1671_v5, %v1670_v4 }
 0x1b0   :  { %1678 = vadd.xlane.f32.xlu1 %v1677_v7 }
 0x23b   :  { %v1674_v8 = vpop.xlane.xlu0 %1673 }
 0x23c   :  { %1676 = vst.msk [vmem:[%s2061_s3] sm:$0xff] %vm1675_vm10, %v1674_v8 }
 0x23d   :  { %v1679_v9 = vpop.xlane.xlu1 %1678 }
 0x23e   :  { %1680 = vst.msk [vmem:[%s2062_s4] sm:$0xff] %vm1675_vm10, %v1679_v9 }

</bundles_post_ra>
